<compile_context>
chip_gen: v5e
topology: v5e:2x2
jax: 0.10.0
libtpu: 0.0.40
codegen_flags: <defaults>
</compile_context>

<pallas_src>
import functools

import jax
import jax.numpy as jnp
from jax.experimental import pallas as pl
from jax.experimental.pallas import tpu as pltpu


def _round_up(n, m):
    return ((n + m - 1) // m) * m


def _rcm_kernel(T, Bp, L, Hp, fuse_hh, x_ref, wih0_ref, *rest):
    """Multi-layer tanh RNN (no bias) over time, then fused tanh(linear) heads.

    x_ref     : (T*Bp, Din)            VMEM bf16 (time-major, batch padded to 8)
    wih0_ref  : (Din, Hp)              VMEM bf16 (layer-0 input->hidden, transposed, lane-padded)
    wihr_ref  : (L-1, Hp, Hp)          VMEM bf16 (only present when L > 1)
    whh_ref   : (L*Hp, L*Hp) if fused  VMEM bf16 (block-diagonal hidden->hidden)
                (L, Hp, Hp) otherwise
    whead_ref : (Hp, MOp)              VMEM bf16 (all heads concatenated, transposed)
    out_ref   : (Bp, MOp)              VMEM f32  (lane-dense fused head output)
    """
    if L > 1:
        wihr_ref = rest[0]
        rest = rest[1:]
    else:
        wihr_ref = None
    whh_ref, whead_ref, out_ref = rest

    # Hoisted layer-0 input projection: one GEMM for all timesteps, off the
    # serial recurrence chain.  With Bp = 8, each per-timestep row slice below
    # is a whole (8, 128) tile select (no sublane shuffles / masked selects).
    xw0 = jnp.dot(x_ref[...], wih0_ref[...],
                  preferred_element_type=jnp.float32)          # (T*Bp, Hp) f32

    # Hidden state carried in vregs as bf16 (only consumed by MXU matmuls);
    # padded lanes stay exactly zero throughout the recurrence.
    h = [jnp.zeros((Bp, Hp), jnp.bfloat16) for _ in range(L)]

    # T is small and static: full unroll so the LLO scheduler sees across
    # timesteps.  Weight refs are indexed at the dot sites to keep their
    # live ranges short (one matmul).
    for t in range(T):
        if fuse_hh:
            # All L hidden->hidden matmuls use the *previous* step's state, so
            # one block-diagonal matmul covers them (exact: off-diagonal zeros
            # contribute exact +0.0 partial products).
            h_cat = h[0] if L == 1 else jnp.concatenate(h, axis=-1)
            hh = jnp.dot(h_cat, whh_ref[...],
                         preferred_element_type=jnp.float32)   # (Bp, L*Hp)
            hh_parts = [hh[:, l * Hp:(l + 1) * Hp] for l in range(L)]
        else:
            hh_parts = [jnp.dot(h[l], whh_ref[l],
                                preferred_element_type=jnp.float32)
                        for l in range(L)]

        # Layer 0: uses the hoisted input projection.  tanh/add in f32.
        h_new = jnp.tanh(xw0[t * Bp:(t + 1) * Bp, :]
                         + hh_parts[0]).astype(jnp.bfloat16)
        new_h = [h_new]
        for l in range(1, L):
            ih = jnp.dot(h_new, wihr_ref[l - 1],
                         preferred_element_type=jnp.float32)
            h_new = jnp.tanh(ih + hh_parts[l]).astype(jnp.bfloat16)
            new_h.append(h_new)
        h = new_h

    # Fused heads: out[:, m*O:(m+1)*O] = tanh(top @ W_head_m^T), one GEMM,
    # lane-dense (multiple-of-128) unmasked stores.
    out_ref[...] = jnp.tanh(
        jnp.dot(h[L - 1], whead_ref[...], preferred_element_type=jnp.float32)
    ).astype(out_ref.dtype)


def make_rcm_forward(w_ih, w_hh, w_heads):
    """Prepare kernel-ready weights ONCE; return a jitted fn x -> (B, M, O).

    w_ih    : list of length L; w_ih[0]: (H, D_in), w_ih[l>0]: (H, H)
    w_hh    : list of length L of (H, H)
    w_heads : (M, O, H)  stacked nn.Linear(hidden, output, bias=False) weights
    """
    L = len(w_ih)
    H = w_hh[0].shape[0]
    M, O, _ = w_heads.shape
    Din = w_ih[0].shape[1]

    Hp = _round_up(H, 128)        # lane-pad each layer's hidden block
    MOp = _round_up(M * O, 128)   # lane-dense fused head output width

    # Scaling guard: block-diagonal fusion costs O((L*Hp)^2) weight bytes and
    # FLOPs; beyond this bound use per-layer hh matmuls instead.
    fuse_hh = (L <= 4) and (L * Hp <= 512)

    # ---- weight-side preprocessing (hoisted out of the per-call path) ----
    wih0 = jnp.zeros((Din, Hp), jnp.float32)
    wih0 = wih0.at[:, :H].set(jnp.asarray(w_ih[0], jnp.float32).T)
    wih0 = wih0.astype(jnp.bfloat16)                              # (Din, Hp)

    wihr = None
    if L > 1:
        blocks = []
        for l in range(1, L):
            w = jnp.zeros((Hp, Hp), jnp.float32)
            w = w.at[:H, :H].set(jnp.asarray(w_ih[l], jnp.float32).T)
            blocks.append(w)
        wihr = jnp.stack(blocks, 0).astype(jnp.bfloat16)          # (L-1, Hp, Hp)

    if fuse_hh:
        whh = jnp.zeros((L * Hp, L * Hp), jnp.float32)
        for l in range(L):
            whh = whh.at[l * Hp:l * Hp + H, l * Hp:l * Hp + H].set(
                jnp.asarray(w_hh[l], jnp.float32).T)
        whh = whh.astype(jnp.bfloat16)                            # (L*Hp, L*Hp)
    else:
        blocks = []
        for l in range(L):
            w = jnp.zeros((Hp, Hp), jnp.float32)
            w = w.at[:H, :H].set(jnp.asarray(w_hh[l], jnp.float32).T)
            blocks.append(w)
        whh = jnp.stack(blocks, 0).astype(jnp.bfloat16)           # (L, Hp, Hp)

    whead = jnp.zeros((Hp, MOp), jnp.float32)
    whead = whead.at[:H, :M * O].set(
        jnp.transpose(jnp.asarray(w_heads, jnp.float32), (2, 0, 1))
        .reshape(H, M * O))
    whead = whead.astype(jnp.bfloat16)                            # (Hp, MOp)

    weight_args = [wih0] + ([wihr] if L > 1 else []) + [whh, whead]

    def fwd(x):
        B, T, _ = x.shape
        Bp = _round_up(B, 8)   # sublane-align the batch (padded rows are zero)

        # Time-major, batch-padded, flattened: layer-0 projection is one GEMM.
        xt = jnp.transpose(x, (1, 0, 2)).astype(jnp.float32)      # (T, B, Din)
        xt = jnp.pad(xt, ((0, 0), (0, Bp - B), (0, 0)))           # (T, Bp, Din)
        x2d = xt.reshape(T * Bp, Din).astype(jnp.bfloat16)

        kernel = functools.partial(_rcm_kernel, T, Bp, L, Hp, fuse_hh)
        nargs = 1 + len(weight_args)
        out = pl.pallas_call(
            kernel,
            out_shape=jax.ShapeDtypeStruct((Bp, MOp), jnp.float32),
            in_specs=[pl.BlockSpec(memory_space=pltpu.MemorySpace.VMEM)] * nargs,
            out_specs=pl.BlockSpec(memory_space=pltpu.MemorySpace.VMEM),
        )(x2d, *weight_args)
        return out[:B, :M * O].reshape(B, M, O)

    return jax.jit(fwd)


def rcm_reference(x, w_ih, w_hh, w_heads):
    """Pure-JAX f32 reference matching PyTorch nn.RNN(bias=False, tanh)."""
    B, T, _ = x.shape
    L = len(w_ih)
    H = w_hh[0].shape[0]
    h = [jnp.zeros((B, H), jnp.float32) for _ in range(L)]
    for t in range(T):
        inp = x[:, t, :]
        for l in range(L):
            h[l] = jnp.tanh(inp @ w_ih[l].T + h[l] @ w_hh[l].T)
            inp = h[l]
    last = h[-1]
    outs = [jnp.tanh(last @ w_heads[m].T) for m in range(w_heads.shape[0])]
    return jnp.stack(outs, 1)


if __name__ == "__main__":
    # Small shapes consistent with the module: m=5 (quatrain), 2 RNN layers.
    m = 5
    B, T = 2, 8
    input_size, hidden_size, num_layers, output_size = 32, 32, 2, 32
    M = m - 1

    key = jax.random.PRNGKey(0)
    keys = jax.random.split(key, 2 * num_layers + 2)

    # Deterministic synthetic parameters (PyTorch weight shape conventions).
    w_ih = []
    w_hh = []
    for l in range(num_layers):
        in_feat = input_size if l == 0 else hidden_size
        w_ih.append(0.1 * jax.random.normal(keys[2 * l],
                                            (hidden_size, in_feat), jnp.float32))
        w_hh.append(0.1 * jax.random.normal(keys[2 * l + 1],
                                            (hidden_size, hidden_size),
                                            jnp.float32))
    w_heads = 0.1 * jax.random.normal(keys[-2],
                                      (M, output_size, hidden_size), jnp.float32)

    x = jax.random.normal(keys[-1], (B, T, input_size), jnp.float32)

    rcm_fwd = make_rcm_forward(w_ih, w_hh, w_heads)   # weight prep cached here
    out = jax.block_until_ready(rcm_fwd(x))

    ref = rcm_reference(x, w_ih, w_hh, w_heads)
    assert out.shape == (B, M, output_size), out.shape
    # bf16 MXU operands (f32 accumulation) -> loosened tolerance vs f32 ref.
    max_err = float(jnp.max(jnp.abs(out - ref)))
    assert jnp.allclose(out, ref, atol=2e-2, rtol=2e-2), max_err

    print("KERNEL_OK")
</pallas_src>

<mosaic_0001>
module attributes {stable_mosaic.version = 11 : i64} {
  func.func @_rcm_kernel(%arg0: memref<64x32xbf16, #tpu.memory_space<vmem>>, %arg1: memref<32x128xbf16, #tpu.memory_space<vmem>>, %arg2: memref<1x128x128xbf16, #tpu.memory_space<vmem>>, %arg3: memref<256x256xbf16, #tpu.memory_space<vmem>>, %arg4: memref<128x128xbf16, #tpu.memory_space<vmem>>, %arg5: memref<8x128xf32, #tpu.memory_space<vmem>>) attributes {dimension_semantics = [], scalar_prefetch = 0 : i64, scratch_operands = 0 : i64, tpu.core_type = #tpu.core_type<tc>} {
    %c0 = arith.constant 0 : index
    %c0_0 = arith.constant 0 : index
    %0 = vector.load %arg0[%c0, %c0_0] : memref<64x32xbf16, #tpu.memory_space<vmem>>, vector<64x32xbf16>
    %c0_1 = arith.constant 0 : index
    %c0_2 = arith.constant 0 : index
    %1 = vector.load %arg1[%c0_1, %c0_2] : memref<32x128xbf16, #tpu.memory_space<vmem>>, vector<32x128xbf16>
    %cst = arith.constant dense<0.000000e+00> : vector<64x128xf32>
    %2 = tpu.matmul %0, %1, %cst {dimension_numbers = #tpu.dot_dimension_numbers<[1], [0], [0], [1], [0, 0, 1, 1], [], []>} : vector<64x32xbf16>, vector<32x128xbf16>, vector<64x128xf32> -> vector<64x128xf32>
    %cst_3 = arith.constant 0.000000e+00 : bf16
    %3 = vector.broadcast %cst_3 : bf16 to vector<8x128xbf16>
    %cst_4 = arith.constant 0.000000e+00 : bf16
    %4 = vector.broadcast %cst_4 : bf16 to vector<8x128xbf16>
    %5 = tpu.concatenate %3, %4 in 1 : vector<8x128xbf16>, vector<8x128xbf16> -> vector<8x256xbf16>
    %c0_5 = arith.constant 0 : index
    %c0_6 = arith.constant 0 : index
    %6 = vector.load %arg3[%c0_5, %c0_6] : memref<256x256xbf16, #tpu.memory_space<vmem>>, vector<256x256xbf16>
    %cst_7 = arith.constant dense<0.000000e+00> : vector<8x256xf32>
    %7 = tpu.matmul %5, %6, %cst_7 {dimension_numbers = #tpu.dot_dimension_numbers<[1], [0], [0], [1], [0, 0, 1, 1], [], []>} : vector<8x256xbf16>, vector<256x256xbf16>, vector<8x256xf32> -> vector<8x256xf32>
    %8 = vector.extract_strided_slice %7 {offsets = [0, 0], sizes = [8, 128], strides = [1, 1]} : vector<8x256xf32> to vector<8x128xf32>
    %9 = vector.extract_strided_slice %7 {offsets = [0, 128], sizes = [8, 128], strides = [1, 1]} : vector<8x256xf32> to vector<8x128xf32>
    %10 = vector.extract_strided_slice %2 {offsets = [0, 0], sizes = [8, 128], strides = [1, 1]} : vector<64x128xf32> to vector<8x128xf32>
    %11 = arith.addf %10, %8 : vector<8x128xf32>
    %12 = math.tanh %11 : vector<8x128xf32>
    %13 = arith.truncf %12 : vector<8x128xf32> to vector<8x128xbf16>
    %c0_8 = arith.constant 0 : index
    %c0_9 = arith.constant 0 : index
    %c0_10 = arith.constant 0 : index
    %14 = vector.load %arg2[%c0_8, %c0_9, %c0_10] : memref<1x128x128xbf16, #tpu.memory_space<vmem>>, vector<1x128x128xbf16>
    %15 = vector.shape_cast %14 : vector<1x128x128xbf16> to vector<128x128xbf16>
    %cst_11 = arith.constant dense<0.000000e+00> : vector<8x128xf32>
    %16 = tpu.matmul %13, %15, %cst_11 {dimension_numbers = #tpu.dot_dimension_numbers<[1], [0], [0], [1], [0, 0, 1, 1], [], []>} : vector<8x128xbf16>, vector<128x128xbf16>, vector<8x128xf32> -> vector<8x128xf32>
    %17 = arith.addf %16, %9 : vector<8x128xf32>
    %18 = math.tanh %17 : vector<8x128xf32>
    %19 = arith.truncf %18 : vector<8x128xf32> to vector<8x128xbf16>
    %20 = tpu.concatenate %13, %19 in 1 : vector<8x128xbf16>, vector<8x128xbf16> -> vector<8x256xbf16>
    %c0_12 = arith.constant 0 : index
    %c0_13 = arith.constant 0 : index
    %21 = vector.load %arg3[%c0_12, %c0_13] : memref<256x256xbf16, #tpu.memory_space<vmem>>, vector<256x256xbf16>
    %cst_14 = arith.constant dense<0.000000e+00> : vector<8x256xf32>
    %22 = tpu.matmul %20, %21, %cst_14 {dimension_numbers = #tpu.dot_dimension_numbers<[1], [0], [0], [1], [0, 0, 1, 1], [], []>} : vector<8x256xbf16>, vector<256x256xbf16>, vector<8x256xf32> -> vector<8x256xf32>
    %23 = vector.extract_strided_slice %22 {offsets = [0, 0], sizes = [8, 128], strides = [1, 1]} : vector<8x256xf32> to vector<8x128xf32>
    %24 = vector.extract_strided_slice %22 {offsets = [0, 128], sizes = [8, 128], strides = [1, 1]} : vector<8x256xf32> to vector<8x128xf32>
    %25 = vector.extract_strided_slice %2 {offsets = [8, 0], sizes = [8, 128], strides = [1, 1]} : vector<64x128xf32> to vector<8x128xf32>
    %26 = arith.addf %25, %23 : vector<8x128xf32>
    %27 = math.tanh %26 : vector<8x128xf32>
    %28 = arith.truncf %27 : vector<8x128xf32> to vector<8x128xbf16>
    %c0_15 = arith.constant 0 : index
    %c0_16 = arith.constant 0 : index
    %c0_17 = arith.constant 0 : index
    %29 = vector.load %arg2[%c0_15, %c0_16, %c0_17] : memref<1x128x128xbf16, #tpu.memory_space<vmem>>, vector<1x128x128xbf16>
    %30 = vector.shape_cast %29 : vector<1x128x128xbf16> to vector<128x128xbf16>
    %cst_18 = arith.constant dense<0.000000e+00> : vector<8x128xf32>
    %31 = tpu.matmul %28, %30, %cst_18 {dimension_numbers = #tpu.dot_dimension_numbers<[1], [0], [0], [1], [0, 0, 1, 1], [], []>} : vector<8x128xbf16>, vector<128x128xbf16>, vector<8x128xf32> -> vector<8x128xf32>
    %32 = arith.addf %31, %24 : vector<8x128xf32>
    %33 = math.tanh %32 : vector<8x128xf32>
    %34 = arith.truncf %33 : vector<8x128xf32> to vector<8x128xbf16>
    %35 = tpu.concatenate %28, %34 in 1 : vector<8x128xbf16>, vector<8x128xbf16> -> vector<8x256xbf16>
    %c0_19 = arith.constant 0 : index
    %c0_20 = arith.constant 0 : index
    %36 = vector.load %arg3[%c0_19, %c0_20] : memref<256x256xbf16, #tpu.memory_space<vmem>>, vector<256x256xbf16>
    %cst_21 = arith.constant dense<0.000000e+00> : vector<8x256xf32>
    %37 = tpu.matmul %35, %36, %cst_21 {dimension_numbers = #tpu.dot_dimension_numbers<[1], [0], [0], [1], [0, 0, 1, 1], [], []>} : vector<8x256xbf16>, vector<256x256xbf16>, vector<8x256xf32> -> vector<8x256xf32>
    %38 = vector.extract_strided_slice %37 {offsets = [0, 0], sizes = [8, 128], strides = [1, 1]} : vector<8x256xf32> to vector<8x128xf32>
    %39 = vector.extract_strided_slice %37 {offsets = [0, 128], sizes = [8, 128], strides = [1, 1]} : vector<8x256xf32> to vector<8x128xf32>
    %40 = vector.extract_strided_slice %2 {offsets = [16, 0], sizes = [8, 128], strides = [1, 1]} : vector<64x128xf32> to vector<8x128xf32>
    %41 = arith.addf %40, %38 : vector<8x128xf32>
    %42 = math.tanh %41 : vector<8x128xf32>
    %43 = arith.truncf %42 : vector<8x128xf32> to vector<8x128xbf16>
    %c0_22 = arith.constant 0 : index
    %c0_23 = arith.constant 0 : index
    %c0_24 = arith.constant 0 : index
    %44 = vector.load %arg2[%c0_22, %c0_23, %c0_24] : memref<1x128x128xbf16, #tpu.memory_space<vmem>>, vector<1x128x128xbf16>
    %45 = vector.shape_cast %44 : vector<1x128x128xbf16> to vector<128x128xbf16>
    %cst_25 = arith.constant dense<0.000000e+00> : vector<8x128xf32>
    %46 = tpu.matmul %43, %45, %cst_25 {dimension_numbers = #tpu.dot_dimension_numbers<[1], [0], [0], [1], [0, 0, 1, 1], [], []>} : vector<8x128xbf16>, vector<128x128xbf16>, vector<8x128xf32> -> vector<8x128xf32>
    %47 = arith.addf %46, %39 : vector<8x128xf32>
    %48 = math.tanh %47 : vector<8x128xf32>
    %49 = arith.truncf %48 : vector<8x128xf32> to vector<8x128xbf16>
    %50 = tpu.concatenate %43, %49 in 1 : vector<8x128xbf16>, vector<8x128xbf16> -> vector<8x256xbf16>
    %c0_26 = arith.constant 0 : index
    %c0_27 = arith.constant 0 : index
    %51 = vector.load %arg3[%c0_26, %c0_27] : memref<256x256xbf16, #tpu.memory_space<vmem>>, vector<256x256xbf16>
    %cst_28 = arith.constant dense<0.000000e+00> : vector<8x256xf32>
    %52 = tpu.matmul %50, %51, %cst_28 {dimension_numbers = #tpu.dot_dimension_numbers<[1], [0], [0], [1], [0, 0, 1, 1], [], []>} : vector<8x256xbf16>, vector<256x256xbf16>, vector<8x256xf32> -> vector<8x256xf32>
    %53 = vector.extract_strided_slice %52 {offsets = [0, 0], sizes = [8, 128], strides = [1, 1]} : vector<8x256xf32> to vector<8x128xf32>
    %54 = vector.extract_strided_slice %52 {offsets = [0, 128], sizes = [8, 128], strides = [1, 1]} : vector<8x256xf32> to vector<8x128xf32>
    %55 = vector.extract_strided_slice %2 {offsets = [24, 0], sizes = [8, 128], strides = [1, 1]} : vector<64x128xf32> to vector<8x128xf32>
    %56 = arith.addf %55, %53 : vector<8x128xf32>
    %57 = math.tanh %56 : vector<8x128xf32>
    %58 = arith.truncf %57 : vector<8x128xf32> to vector<8x128xbf16>
    %c0_29 = arith.constant 0 : index
    %c0_30 = arith.constant 0 : index
    %c0_31 = arith.constant 0 : index
    %59 = vector.load %arg2[%c0_29, %c0_30, %c0_31] : memref<1x128x128xbf16, #tpu.memory_space<vmem>>, vector<1x128x128xbf16>
    %60 = vector.shape_cast %59 : vector<1x128x128xbf16> to vector<128x128xbf16>
    %cst_32 = arith.constant dense<0.000000e+00> : vector<8x128xf32>
    %61 = tpu.matmul %58, %60, %cst_32 {dimension_numbers = #tpu.dot_dimension_numbers<[1], [0], [0], [1], [0, 0, 1, 1], [], []>} : vector<8x128xbf16>, vector<128x128xbf16>, vector<8x128xf32> -> vector<8x128xf32>
    %62 = arith.addf %61, %54 : vector<8x128xf32>
    %63 = math.tanh %62 : vector<8x128xf32>
    %64 = arith.truncf %63 : vector<8x128xf32> to vector<8x128xbf16>
    %65 = tpu.concatenate %58, %64 in 1 : vector<8x128xbf16>, vector<8x128xbf16> -> vector<8x256xbf16>
    %c0_33 = arith.constant 0 : index
    %c0_34 = arith.constant 0 : index
    %66 = vector.load %arg3[%c0_33, %c0_34] : memref<256x256xbf16, #tpu.memory_space<vmem>>, vector<256x256xbf16>
    %cst_35 = arith.constant dense<0.000000e+00> : vector<8x256xf32>
    %67 = tpu.matmul %65, %66, %cst_35 {dimension_numbers = #tpu.dot_dimension_numbers<[1], [0], [0], [1], [0, 0, 1, 1], [], []>} : vector<8x256xbf16>, vector<256x256xbf16>, vector<8x256xf32> -> vector<8x256xf32>
    %68 = vector.extract_strided_slice %67 {offsets = [0, 0], sizes = [8, 128], strides = [1, 1]} : vector<8x256xf32> to vector<8x128xf32>
    %69 = vector.extract_strided_slice %67 {offsets = [0, 128], sizes = [8, 128], strides = [1, 1]} : vector<8x256xf32> to vector<8x128xf32>
    %70 = vector.extract_strided_slice %2 {offsets = [32, 0], sizes = [8, 128], strides = [1, 1]} : vector<64x128xf32> to vector<8x128xf32>
    %71 = arith.addf %70, %68 : vector<8x128xf32>
    %72 = math.tanh %71 : vector<8x128xf32>
    %73 = arith.truncf %72 : vector<8x128xf32> to vector<8x128xbf16>
    %c0_36 = arith.constant 0 : index
    %c0_37 = arith.constant 0 : index
    %c0_38 = arith.constant 0 : index
    %74 = vector.load %arg2[%c0_36, %c0_37, %c0_38] : memref<1x128x128xbf16, #tpu.memory_space<vmem>>, vector<1x128x128xbf16>
    %75 = vector.shape_cast %74 : vector<1x128x128xbf16> to vector<128x128xbf16>
    %cst_39 = arith.constant dense<0.000000e+00> : vector<8x128xf32>
    %76 = tpu.matmul %73, %75, %cst_39 {dimension_numbers = #tpu.dot_dimension_numbers<[1], [0], [0], [1], [0, 0, 1, 1], [], []>} : vector<8x128xbf16>, vector<128x128xbf16>, vector<8x128xf32> -> vector<8x128xf32>
    %77 = arith.addf %76, %69 : vector<8x128xf32>
    %78 = math.tanh %77 : vector<8x128xf32>
    %79 = arith.truncf %78 : vector<8x128xf32> to vector<8x128xbf16>
    %80 = tpu.concatenate %73, %79 in 1 : vector<8x128xbf16>, vector<8x128xbf16> -> vector<8x256xbf16>
    %c0_40 = arith.constant 0 : index
    %c0_41 = arith.constant 0 : index
    %81 = vector.load %arg3[%c0_40, %c0_41] : memref<256x256xbf16, #tpu.memory_space<vmem>>, vector<256x256xbf16>
    %cst_42 = arith.constant dense<0.000000e+00> : vector<8x256xf32>
    %82 = tpu.matmul %80, %81, %cst_42 {dimension_numbers = #tpu.dot_dimension_numbers<[1], [0], [0], [1], [0, 0, 1, 1], [], []>} : vector<8x256xbf16>, vector<256x256xbf16>, vector<8x256xf32> -> vector<8x256xf32>
    %83 = vector.extract_strided_slice %82 {offsets = [0, 0], sizes = [8, 128], strides = [1, 1]} : vector<8x256xf32> to vector<8x128xf32>
    %84 = vector.extract_strided_slice %82 {offsets = [0, 128], sizes = [8, 128], strides = [1, 1]} : vector<8x256xf32> to vector<8x128xf32>
    %85 = vector.extract_strided_slice %2 {offsets = [40, 0], sizes = [8, 128], strides = [1, 1]} : vector<64x128xf32> to vector<8x128xf32>
    %86 = arith.addf %85, %83 : vector<8x128xf32>
    %87 = math.tanh %86 : vector<8x128xf32>
    %88 = arith.truncf %87 : vector<8x128xf32> to vector<8x128xbf16>
    %c0_43 = arith.constant 0 : index
    %c0_44 = arith.constant 0 : index
    %c0_45 = arith.constant 0 : index
    %89 = vector.load %arg2[%c0_43, %c0_44, %c0_45] : memref<1x128x128xbf16, #tpu.memory_space<vmem>>, vector<1x128x128xbf16>
    %90 = vector.shape_cast %89 : vector<1x128x128xbf16> to vector<128x128xbf16>
    %cst_46 = arith.constant dense<0.000000e+00> : vector<8x128xf32>
    %91 = tpu.matmul %88, %90, %cst_46 {dimension_numbers = #tpu.dot_dimension_numbers<[1], [0], [0], [1], [0, 0, 1, 1], [], []>} : vector<8x128xbf16>, vector<128x128xbf16>, vector<8x128xf32> -> vector<8x128xf32>
    %92 = arith.addf %91, %84 : vector<8x128xf32>
    %93 = math.tanh %92 : vector<8x128xf32>
    %94 = arith.truncf %93 : vector<8x128xf32> to vector<8x128xbf16>
    %95 = tpu.concatenate %88, %94 in 1 : vector<8x128xbf16>, vector<8x128xbf16> -> vector<8x256xbf16>
    %c0_47 = arith.constant 0 : index
    %c0_48 = arith.constant 0 : index
    %96 = vector.load %arg3[%c0_47, %c0_48] : memref<256x256xbf16, #tpu.memory_space<vmem>>, vector<256x256xbf16>
    %cst_49 = arith.constant dense<0.000000e+00> : vector<8x256xf32>
    %97 = tpu.matmul %95, %96, %cst_49 {dimension_numbers = #tpu.dot_dimension_numbers<[1], [0], [0], [1], [0, 0, 1, 1], [], []>} : vector<8x256xbf16>, vector<256x256xbf16>, vector<8x256xf32> -> vector<8x256xf32>
    %98 = vector.extract_strided_slice %97 {offsets = [0, 0], sizes = [8, 128], strides = [1, 1]} : vector<8x256xf32> to vector<8x128xf32>
    %99 = vector.extract_strided_slice %97 {offsets = [0, 128], sizes = [8, 128], strides = [1, 1]} : vector<8x256xf32> to vector<8x128xf32>
    %100 = vector.extract_strided_slice %2 {offsets = [48, 0], sizes = [8, 128], strides = [1, 1]} : vector<64x128xf32> to vector<8x128xf32>
    %101 = arith.addf %100, %98 : vector<8x128xf32>
    %102 = math.tanh %101 : vector<8x128xf32>
    %103 = arith.truncf %102 : vector<8x128xf32> to vector<8x128xbf16>
    %c0_50 = arith.constant 0 : index
    %c0_51 = arith.constant 0 : index
    %c0_52 = arith.constant 0 : index
    %104 = vector.load %arg2[%c0_50, %c0_51, %c0_52] : memref<1x128x128xbf16, #tpu.memory_space<vmem>>, vector<1x128x128xbf16>
    %105 = vector.shape_cast %104 : vector<1x128x128xbf16> to vector<128x128xbf16>
    %cst_53 = arith.constant dense<0.000000e+00> : vector<8x128xf32>
    %106 = tpu.matmul %103, %105, %cst_53 {dimension_numbers = #tpu.dot_dimension_numbers<[1], [0], [0], [1], [0, 0, 1, 1], [], []>} : vector<8x128xbf16>, vector<128x128xbf16>, vector<8x128xf32> -> vector<8x128xf32>
    %107 = arith.addf %106, %99 : vector<8x128xf32>
    %108 = math.tanh %107 : vector<8x128xf32>
    %109 = arith.truncf %108 : vector<8x128xf32> to vector<8x128xbf16>
    %110 = tpu.concatenate %103, %109 in 1 : vector<8x128xbf16>, vector<8x128xbf16> -> vector<8x256xbf16>
    %c0_54 = arith.constant 0 : index
    %c0_55 = arith.constant 0 : index
    %111 = vector.load %arg3[%c0_54, %c0_55] : memref<256x256xbf16, #tpu.memory_space<vmem>>, vector<256x256xbf16>
    %cst_56 = arith.constant dense<0.000000e+00> : vector<8x256xf32>
    %112 = tpu.matmul %110, %111, %cst_56 {dimension_numbers = #tpu.dot_dimension_numbers<[1], [0], [0], [1], [0, 0, 1, 1], [], []>} : vector<8x256xbf16>, vector<256x256xbf16>, vector<8x256xf32> -> vector<8x256xf32>
    %113 = vector.extract_strided_slice %112 {offsets = [0, 0], sizes = [8, 128], strides = [1, 1]} : vector<8x256xf32> to vector<8x128xf32>
    %114 = vector.extract_strided_slice %112 {offsets = [0, 128], sizes = [8, 128], strides = [1, 1]} : vector<8x256xf32> to vector<8x128xf32>
    %115 = vector.extract_strided_slice %2 {offsets = [56, 0], sizes = [8, 128], strides = [1, 1]} : vector<64x128xf32> to vector<8x128xf32>
    %116 = arith.addf %115, %113 : vector<8x128xf32>
    %117 = math.tanh %116 : vector<8x128xf32>
    %118 = arith.truncf %117 : vector<8x128xf32> to vector<8x128xbf16>
    %c0_57 = arith.constant 0 : index
    %c0_58 = arith.constant 0 : index
    %c0_59 = arith.constant 0 : index
    %119 = vector.load %arg2[%c0_57, %c0_58, %c0_59] : memref<1x128x128xbf16, #tpu.memory_space<vmem>>, vector<1x128x128xbf16>
    %120 = vector.shape_cast %119 : vector<1x128x128xbf16> to vector<128x128xbf16>
    %cst_60 = arith.constant dense<0.000000e+00> : vector<8x128xf32>
    %121 = tpu.matmul %118, %120, %cst_60 {dimension_numbers = #tpu.dot_dimension_numbers<[1], [0], [0], [1], [0, 0, 1, 1], [], []>} : vector<8x128xbf16>, vector<128x128xbf16>, vector<8x128xf32> -> vector<8x128xf32>
    %122 = arith.addf %121, %114 : vector<8x128xf32>
    %123 = math.tanh %122 : vector<8x128xf32>
    %124 = arith.truncf %123 : vector<8x128xf32> to vector<8x128xbf16>
    %c0_61 = arith.constant 0 : index
    %c0_62 = arith.constant 0 : index
    %125 = vector.load %arg4[%c0_61, %c0_62] : memref<128x128xbf16, #tpu.memory_space<vmem>>, vector<128x128xbf16>
    %cst_63 = arith.constant dense<0.000000e+00> : vector<8x128xf32>
    %126 = tpu.matmul %124, %125, %cst_63 {dimension_numbers = #tpu.dot_dimension_numbers<[1], [0], [0], [1], [0, 0, 1, 1], [], []>} : vector<8x128xbf16>, vector<128x128xbf16>, vector<8x128xf32> -> vector<8x128xf32>
    %127 = math.tanh %126 : vector<8x128xf32>
    %c0_64 = arith.constant 0 : index
    %c0_65 = arith.constant 0 : index
    %128 = vector.load %arg5[%c0_64, %c0_65] : memref<8x128xf32, #tpu.memory_space<vmem>>, vector<8x128xf32>
    tpu.vector_store %arg5[%c0_64, %c0_65], %127 {strides = array<i32>} : memref<8x128xf32, #tpu.memory_space<vmem>>, vector<8x128xf32>,
    return
  }
}

</mosaic_0001>

<bundles_post_ra>
// kernel: fwd.1
= control target key start
LH: loop header
LB: loop body
LE: loop exit
PB: predicated region body
PF: predicated region fallthrough
CT: control target
= control target key end

     0   :  { %10 = vsyncpa [#allocation3], 0  ;;  %s1923_s0 = inlined_call_operand.vmem [shape: bf16[64,32], index: 0, kind: input, shape index: {}]   ;;  %s1924_s1 = inlined_call_operand.vmem [shape: bf16[32,128], index: 1, kind: input, shape index: {}]   ;;  %s1925_s2 = inlined_call_operand.hbm [shape: bf16[1,128,128], index: 2, kind: input, shape index: {}]   ;;  %s1926_s3 = inlined_call_operand.hbm [shape: bf16[256,256], index: 3, kind: input, shape index: {}]   ;;  %s1927_s4 = inlined_call_operand.vmem [shape: bf16[128,128], index: 4, kind: input, shape index: {}]   ;;  %s1928_s5 = inlined_call_operand.vmem [shape: f32[8,128], index: 5, kind: output, shape index: {}]  }
   0x1   :  { %s20_s20 = sshll.u32 %s1925_s2, 4  ;;  %s21_s20 = int_to_ptr.hbm [resolvable:$true] %s20_s20 }
   0x2   :  { %11 = vsyncpa [#allocation5], 0  ;;  %s1407_s21 = smov [#allocation2]   ;;  %s33_s25 = sshll.u32 %s1926_s3, 4  ;;  %s34_s25 = int_to_ptr.hbm [resolvable:$true] %s33_s25 }
   0x3   :  { %s22_s22 = sshll.u32 %s1407_s21, 4  ;;  %s1408_s26 = smov 64   ;;  %s23_s22 = int_to_ptr.vmem [resolvable:$true] %s22_s22 }
   0x4   :  { %s1409_s27 = smov 4   ;;  %s1410_s28 = smov [#allocation4]  }
   0x5   :  { %28 = dma.hbm_to_vmem [thread:$0]  %s21_s20, 1024, %s23_s22, [#allocation3], %s1408_s26, %s1408_s26, %s1409_s27  }
   0x6   :  { %s35_s29 = sshll.u32 %s1410_s28, 4  ;;  %s1411_s30 = smov 128   ;;  %s36_s29 = int_to_ptr.vmem [resolvable:$true] %s35_s29 }
   0x7   :  { %s1412_s6 = smov 8  }
   0x8   :  { %41 = dma.hbm_to_vmem [thread:$0]  %s34_s25, 4096, %s36_s29, [#allocation5], %s1411_s30, %s1411_s30, %s1412_s6  }
   0x9   :  { %1403 = dma.done.wait [#allocation3], 1024  }
   0xa   :  { %1404 = vsyncadd [#allocation3], 4294966272 }
   0xb   :  { %1405 = dma.done.wait [#allocation5], 4096  }
   0xc   :  { %1406 = vsyncadd [#allocation5], 4294963200  ;;  %v1126_v0 = vld [vmem:[#allocation4 + $0x70] sm:$0xf]  ;;  %v1281_v1 = vld [vmem:[#allocation4 + $0x74] sm:$0xf0] }
   0xd   :  { %v1190_v2 = vld [vmem:[#allocation4 + $0xf0] sm:$0xf]  ;;  %v1450_v3 = vor.u32 %v1281_v1, %v1126_v0  ;;  %v1297_v4 = vld [vmem:[#allocation4 + $0xf4] sm:$0xf0]  ;;  %v1118_v5 = vld [vmem:[#allocation4 + $0x60] sm:$0xf] }
   0xe   :  { %v1279_v6 = vld [vmem:[#allocation4 + $0x64] sm:$0xf0]  ;;  %v1452_v7 = vor.u32 %v1297_v4, %v1190_v2  ;;  %v1182_v8 = vld [vmem:[#allocation4 + $0xe0] sm:$0xf]  ;;  %v1110_v12 = vld [vmem:[#allocation4 + $0x50] sm:$0xf] }
   0xf   :  { %v1295_v9 = vld [vmem:[#allocation4 + $0xe4] sm:$0xf0]  ;;  %331 = vmatpush.bf16.msra.mxu1 %v1450_v3  ;;  %v1455_v10 = vor.u32 %v1279_v6, %v1118_v5  ;;  %v1277_v13 = vld [vmem:[#allocation4 + $0x54] sm:$0xf0]  ;;  %v1174_v14 = vld [vmem:[#allocation4 + $0xd0] sm:$0xf] }
  0x10   :  { %344 = vmatpush.bf16.msra.mxu2 %v1452_v7  ;;  %v1458_v11 = vor.u32 %v1295_v9, %v1182_v8  ;;  %v1293_v15 = vld [vmem:[#allocation4 + $0xd4] sm:$0xf0]  ;;  %v1461_v16 = vor.u32 %v1277_v13, %v1110_v12  ;;  %v1102_v18 = vld [vmem:[#allocation4 + $0x40] sm:$0xf]  ;;  %v1275_v19 = vld [vmem:[#allocation4 + $0x44] sm:$0xf0] }
  0x11   :  { %v1464_v17 = vor.u32 %v1293_v15, %v1174_v14  ;;  %v1265_v20 = vld [vmem:[%s1924_s1 + $0x8] sm:$0xff]  ;;  %v1166_v21 = vld [vmem:[#allocation4 + $0xc0] sm:$0xf]  ;;  %v1473_v24 = vor.u32 %v1275_v19, %v1102_v18  ;;  %v1094_v25 = vld [vmem:[#allocation4 + $0x30] sm:$0xf]  ;;  %vm97_vm0 = vcmask 261120  }
  0x12   :  { %v1291_v22 = vld [vmem:[#allocation4 + $0xc4] sm:$0xf0]  ;;  %116 = vmatpush.bf16.msra.mxu0 %v1265_v20  ;;  %v1264_v23 = vld [vmem:[%s1924_s1] sm:$0xff]  ;;  %v1273_v26 = vld [vmem:[#allocation4 + $0x34] sm:$0xf0] }
  0x13   :  { %332 = vmatpush.bf16.msra.mxu1 %v1455_v10  ;;  %v1280_v27 = vld [vmem:[#allocation4 + $0x74] sm:$0xf]  ;;  %v1476_v28 = vor.u32 %v1291_v22, %v1166_v21  ;;  %v1158_v29 = vld [vmem:[#allocation4 + $0xb0] sm:$0xf]  ;;  %v1289_v30 = vld [vmem:[#allocation4 + $0xb4] sm:$0xf0]  ;;  %v1484_v36 = vor.u32 %v1273_v26, %v1094_v25 }
  0x14   :  { %345 = vmatpush.bf16.msra.mxu2 %v1458_v11  ;;  %v1128_v31 = vld [vmem:[#allocation4 + $0x78] sm:$0xf0]  ;;  %v1260_v32 = vld [vmem:[%s1923_s0] sm:$0xff]  ;;  %v1120_v35 = vld [vmem:[#allocation4 + $0x68] sm:$0xf0]  ;;  %v1490_v39 = vor.u32 %v1289_v30, %v1158_v29 }
  0x15   :  { %v1481_v33 = vor.u32 %v1280_v27, %v1128_v31  ;;  %v1278_v34 = vld [vmem:[#allocation4 + $0x64] sm:$0xf]  ;;  %v1086_v37 = vld [vmem:[#allocation4 + $0x20] sm:$0xf]  ;;  %v1271_v40 = vld [vmem:[#allocation4 + $0x24] sm:$0xf0] }
  0x16   :  { %117 = vmatpush.bf16.msra.mxu0 %v1264_v23  ;;  %v1487_v38 = vor.u32 %v1278_v34, %v1120_v35  ;;  %v1276_v41 = vld [vmem:[#allocation4 + $0x54] sm:$0xf]  ;;  %v1112_v42 = vld [vmem:[#allocation4 + $0x58] sm:$0xf0]  ;;  %v1150_v43 = vld [vmem:[#allocation4 + $0xa0] sm:$0xf]  ;;  %v1495_v45 = vor.u32 %v1271_v40, %v1086_v37 }
  0x17   :  { %333 = vmatpush.bf16.msra.mxu1 %v1461_v16  ;;  %357 = vmatpush.bf16.msra.mxu3 %v1481_v33  ;;  %v1287_v44 = vld [vmem:[#allocation4 + $0xa4] sm:$0xf0]  ;;  %v1078_v46 = vld [vmem:[#allocation4 + $0x10] sm:$0xf]  ;;  %v1498_v47 = vor.u32 %v1276_v41, %v1112_v42  ;;  %v1269_v49 = vld [vmem:[#allocation4 + $0x14] sm:$0xf0] }
  0x18   :  { %346 = vmatpush.bf16.msra.mxu2 %v1464_v17  ;;  %v1501_v48 = vor.u32 %v1287_v44, %v1150_v43  ;;  %v1274_v50 = vld [vmem:[#allocation4 + $0x44] sm:$0xf]  ;;  %v1104_v51 = vld [vmem:[#allocation4 + $0x48] sm:$0xf0]  ;;  %v1142_v52 = vld [vmem:[#allocation4 + $0x90] sm:$0xf]  ;;  %v1505_v54 = vor.u32 %v1269_v49, %v1078_v46 }
  0x19   :  { %1064 = vmatmul.msk.bf16.vlgmr.msra.gmra.mxu0 %vm97_vm0, %v1260_v32  ;;  %v1285_v53 = vld [vmem:[#allocation4 + $0x94] sm:$0xf0]  ;;  %v1070_v55 = vld [vmem:[#allocation4] sm:$0xf]  ;;  %v1267_v56 = vld [vmem:[#allocation4 + $0x4] sm:$0xf0]  ;;  %v1508_v57 = vor.u32 %v1274_v50, %v1104_v51 }
  0x1a   :  { %478 = vmatpush.bf16.msrb.mxu0 %v1452_v7  ;;  %v1511_v58 = vor.u32 %v1285_v53, %v1142_v52  ;;  %v1134_v59 = vld [vmem:[#allocation4 + $0x80] sm:$0xf]  ;;  %v1272_v60 = vld [vmem:[#allocation4 + $0x34] sm:$0xf]  ;;  %v1096_v61 = vld [vmem:[#allocation4 + $0x38] sm:$0xf0]  ;;  %v1515_v1 = vor.u32 %v1267_v56, %v1070_v55 }
  0x1b   :  { %334 = vmatpush.bf16.msra.mxu1 %v1473_v24  ;;  %358 = vmatpush.bf16.msra.mxu3 %v1487_v38  ;;  %v1283_v62 = vld [vmem:[#allocation4 + $0x84] sm:$0xf0]  ;;  %v1296_v63 = vld [vmem:[#allocation4 + $0xf4] sm:$0xf]  ;;  %v1192_v0 = vld [vmem:[#allocation4 + $0xf8] sm:$0xf0]  ;;  %v1518_v2 = vor.u32 %v1272_v60, %v1096_v61 }
  0x1c   :  { %347 = vmatpush.bf16.msra.mxu2 %v1476_v28  ;;  %v1521_v4 = vor.u32 %v1283_v62, %v1134_v59  ;;  %v1523_v5 = vor.u32 %v1296_v63, %v1192_v0  ;;  %v1270_v6 = vld [vmem:[#allocation4 + $0x24] sm:$0xf]  ;;  %v1088_v8 = vld [vmem:[#allocation4 + $0x28] sm:$0xf0]  ;;  %v1526_v13 = vld [vmem:[#allocation2 + $0x38] sm:$0xff]  ;;  %v1413_v23 = vmov 0  }
  0x1d   :  { %v1294_v9 = vld [vmem:[#allocation4 + $0xe4] sm:$0xf]  ;;  %v1184_v12 = vld [vmem:[#allocation4 + $0xe8] sm:$0xf0]  ;;  %v1530_v14 = vor.u32 %v1270_v6, %v1088_v8  ;;  %v1268_v18 = vld [vmem:[#allocation4 + $0x14] sm:$0xf] }
  0x1e   :  { %479 = vmatpush.bf16.msrb.mxu0 %v1458_v11  ;;  %v1534_v15 = vor.u32 %v1294_v9, %v1184_v12  ;;  %v1080_v19 = vld [vmem:[#allocation4 + $0x18] sm:$0xf0]  ;;  %v1292_v20 = vld [vmem:[#allocation4 + $0xd4] sm:$0xf]  ;;  %v1266_v27 = vld [vmem:[#allocation4 + $0x4] sm:$0xf] }
  0x1f   :  { %335 = vmatpush.bf16.msra.mxu1 %v1484_v36  ;;  %359 = vmatpush.bf16.msra.mxu3 %v1498_v47  ;;  %v1176_v21 = vld [vmem:[#allocation4 + $0xd8] sm:$0xf0]  ;;  %v1537_v22 = vld [vmem:[#allocation2 + $0x30] sm:$0xff]  ;;  %v1541_v25 = vor.u32 %v1268_v18, %v1080_v19  ;;  %v1072_v29 = vld [vmem:[#allocation4 + $0x8] sm:$0xf0] }
  0x20   :  { %348 = vmatpush.bf16.msra.mxu2 %v1490_v39  ;;  %v1544_v26 = vor.u32 %v1292_v20, %v1176_v21  ;;  %v1290_v30 = vld [vmem:[#allocation4 + $0xc4] sm:$0xf]  ;;  %v1168_v31 = vld [vmem:[#allocation4 + $0xc8] sm:$0xf0]  ;;  %v1551_v34 = vor.u32 %v1266_v27, %v1072_v29  ;;  %v1288_v37 = vld [vmem:[#allocation4 + $0xb4] sm:$0xf] }
  0x21   :  { %v1547_v32 = vld [vmem:[#allocation2 + $0x28] sm:$0xff]  ;;  %v1554_v35 = vor.u32 %v1290_v30, %v1168_v31  ;;  %v1160_v40 = vld [vmem:[#allocation4 + $0xb8] sm:$0xf0]  ;;  %v1286_v42 = vld [vmem:[#allocation4 + $0xa4] sm:$0xf] }
  0x22   :  { %480 = vmatpush.bf16.msrb.mxu0 %v1464_v17  ;;  %v1560_v41 = vor.u32 %v1288_v37, %v1160_v40  ;;  %v1152_v43 = vld [vmem:[#allocation4 + $0xa8] sm:$0xf0]  ;;  %v1284_v46 = vld [vmem:[#allocation4 + $0x94] sm:$0xf]  ;;  %v1144_v49 = vld [vmem:[#allocation4 + $0x98] sm:$0xf0] }
  0x23   :  { %336 = vmatpush.bf16.msra.mxu1 %v1495_v45  ;;  %360 = vmatpush.bf16.msra.mxu3 %v1508_v57  ;;  %v1566_v44 = vor.u32 %v1286_v42, %v1152_v43  ;;  %v1571_v50 = vor.u32 %v1284_v46, %v1144_v49  ;;  %v1282_v51 = vld [vmem:[#allocation4 + $0x84] sm:$0xf]  ;;  %v1136_v52 = vld [vmem:[#allocation4 + $0x88] sm:$0xf0]  ;;  %v1611_v56 = vld [vmem:[#allocation2 + $0x18] sm:$0xff] }
  0x24   :  { %349 = vmatpush.bf16.msra.mxu2 %v1501_v48  ;;  %v1576_v53 = vor.u32 %v1282_v51, %v1136_v52  ;;  %v1608_v55 = vld [vmem:[#allocation2 + $0x20] sm:$0xff]  ;;  %v1616_v59 = vld [vmem:[#allocation2 + $0x10] sm:$0xff]  ;;  %v1620_v60 = vld [vmem:[#allocation2 + $0x8] sm:$0xff] }
  0x25   :  { %v1624_v61 = vld [vmem:[#allocation2] sm:$0xff]  ;;  %v1261_v62 = vld [vmem:[%s1923_s0 + $0x8] sm:$0xff]  ;;  %v1262_v0 = vld [vmem:[%s1923_s0 + $0x10] sm:$0xff] }
  0x26   :  { %481 = vmatpush.bf16.msrb.mxu0 %v1476_v28  ;;  %v1263_v27 = vld [vmem:[%s1923_s0 + $0x18] sm:$0xff] }
  0x27   :  { %337 = vmatpush.bf16.msra.mxu1 %v1505_v54  ;;  %361 = vmatpush.bf16.msra.mxu3 %v1518_v2 }
  0x28   :  { %350 = vmatpush.bf16.msra.mxu2 %v1511_v58 }
  0x29   :  { %1065 = vmatmul.msk.bf16.gmra.mxu0 %vm97_vm0, %v1261_v62 }
  0x2a   :  { %482 = vmatpush.bf16.msrb.mxu0 %v1490_v39 }
  0x2b   :  { %338 = vmatpush.bf16.msra.mxu1 %v1515_v1  ;;  %362 = vmatpush.bf16.msra.mxu3 %v1530_v14 }
  0x2c   :  { %351 = vmatpush.bf16.msra.mxu2 %v1521_v4 }
  0x2e   :  { %339 = vmatmul.bf16.vlgmr.msra.gmra.mxu1 %v1413_v23  ;;  %483 = vmatpush.bf16.msrb.mxu0 %v1501_v48 }
  0x2f   :  { %370 = vmatpush.bf16.msrb.mxu1 %v1523_v5  ;;  %352 = vmatmul.bf16.vlgmr.msra.gmra.mxu2 %v1413_v23 }
  0x30   :  { %450 = vmatpush.bf16.msrb.mxu2 %v1526_v13  ;;  %363 = vmatpush.bf16.msra.mxu3 %v1541_v25 }
  0x32   :  { %484 = vmatpush.bf16.msrb.mxu0 %v1511_v58 }
  0x33   :  { %371 = vmatpush.bf16.msrb.mxu1 %v1534_v15 }
  0x34   :  { %451 = vmatpush.bf16.msrb.mxu2 %v1537_v22  ;;  %364 = vmatpush.bf16.msra.mxu3 %v1551_v34 }
  0x36   :  { %485 = vmatpush.bf16.msrb.mxu0 %v1521_v4 }
  0x37   :  { %372 = vmatpush.bf16.msrb.mxu1 %v1544_v26  ;;  %365 = vmatmul.bf16.vlgmr.msra.gmra.mxu3 %v1413_v23 }
  0x38   :  { %452 = vmatpush.bf16.msrb.mxu2 %v1547_v32  ;;  %465 = vmatpush.bf16.msrb.mxu3 %v1450_v3 }
  0x39   :  { %1066 = vmatmul.msk.bf16.gmra.mxu0 %vm97_vm0, %v1262_v0 }
  0x3a   :  { %535 = vmatpush.bf16.msra.mxu0 %v1450_v3 }
  0x3b   :  { %373 = vmatpush.bf16.msrb.mxu1 %v1554_v35 }
  0x3c   :  { %466 = vmatpush.bf16.msrb.mxu3 %v1455_v10  ;;  %453 = vmatpush.bf16.msrb.mxu2 %v1608_v55 }
  0x3e   :  { %536 = vmatpush.bf16.msra.mxu0 %v1455_v10 }
  0x3f   :  { %374 = vmatpush.bf16.msrb.mxu1 %v1560_v41 }
  0x40   :  { %467 = vmatpush.bf16.msrb.mxu3 %v1461_v16  ;;  %454 = vmatpush.bf16.msrb.mxu2 %v1611_v56 }
  0x42   :  { %537 = vmatpush.bf16.msra.mxu0 %v1461_v16 }
  0x43   :  { %375 = vmatpush.bf16.msrb.mxu1 %v1566_v44 }
  0x44   :  { %468 = vmatpush.bf16.msrb.mxu3 %v1473_v24  ;;  %455 = vmatpush.bf16.msrb.mxu2 %v1616_v59 }
  0x46   :  { %538 = vmatpush.bf16.msra.mxu0 %v1473_v24 }
  0x47   :  { %376 = vmatpush.bf16.msrb.mxu1 %v1571_v50 }
  0x48   :  { %469 = vmatpush.bf16.msrb.mxu3 %v1484_v36  ;;  %456 = vmatpush.bf16.msrb.mxu2 %v1620_v60 }
  0x49   :  { %1067 = vmatmul.msk.bf16.gmra.mxu0 %vm97_vm0, %v1263_v27 }
  0x4a   :  { %539 = vmatpush.bf16.msra.mxu0 %v1484_v36 }
  0x4b   :  { %377 = vmatpush.bf16.msrb.mxu1 %v1576_v53 }
  0x4c   :  { %470 = vmatpush.bf16.msrb.mxu3 %v1495_v45  ;;  %457 = vmatpush.bf16.msrb.mxu2 %v1624_v61 }
  0x4e   :  { %378 = vmatmul.bf16.vlgmr.msrb.gmra.mxu1 %v1413_v23  ;;  %540 = vmatpush.bf16.msra.mxu0 %v1495_v45 }
  0x4f   :  { %491 = vmatpush.bf16.msra.mxu1 %v1481_v33 }
  0x50   :  { %471 = vmatpush.bf16.msrb.mxu3 %v1505_v54  ;;  %504 = vmatpush.bf16.msra.mxu2 %v1523_v5 }
  0x52   :  { %541 = vmatpush.bf16.msra.mxu0 %v1505_v54 }
  0x53   :  { %492 = vmatpush.bf16.msra.mxu1 %v1487_v38 }
  0x54   :  { %472 = vmatpush.bf16.msrb.mxu3 %v1515_v1  ;;  %505 = vmatpush.bf16.msra.mxu2 %v1534_v15 }
  0x56   :  { %542 = vmatpush.bf16.msra.mxu0 %v1515_v1 }
  0x57   :  { %493 = vmatpush.bf16.msra.mxu1 %v1498_v47 }
  0x58   :  { %520 = vmatpush.bf16.msra.mxu3 %v1526_v13  ;;  %506 = vmatpush.bf16.msra.mxu2 %v1544_v26 }
  0x5b   :  { %494 = vmatpush.bf16.msra.mxu1 %v1508_v57 }
  0x5c   :  { %521 = vmatpush.bf16.msra.mxu3 %v1537_v22  ;;  %507 = vmatpush.bf16.msra.mxu2 %v1554_v35 }
  0x5f   :  { %495 = vmatpush.bf16.msra.mxu1 %v1518_v2 }
  0x60   :  { %522 = vmatpush.bf16.msra.mxu3 %v1547_v32  ;;  %508 = vmatpush.bf16.msra.mxu2 %v1560_v41 }
  0x63   :  { %496 = vmatpush.bf16.msra.mxu1 %v1530_v14 }
  0x64   :  { %523 = vmatpush.bf16.msra.mxu3 %v1608_v55  ;;  %509 = vmatpush.bf16.msra.mxu2 %v1566_v44 }
  0x67   :  { %497 = vmatpush.bf16.msra.mxu1 %v1541_v25 }
  0x68   :  { %524 = vmatpush.bf16.msra.mxu3 %v1611_v56  ;;  %510 = vmatpush.bf16.msra.mxu2 %v1571_v50 }
  0x6b   :  { %498 = vmatpush.bf16.msra.mxu1 %v1551_v34 }
  0x6c   :  { %525 = vmatpush.bf16.msra.mxu3 %v1616_v59  ;;  %511 = vmatpush.bf16.msra.mxu2 %v1576_v53 }
  0x6f   :  { %548 = vmatpush.bf16.msrb.mxu1 %v1452_v7 }
  0x70   :  { %526 = vmatpush.bf16.msra.mxu3 %v1620_v60 }
  0x73   :  { %549 = vmatpush.bf16.msrb.mxu1 %v1458_v11 }
  0x74   :  { %527 = vmatpush.bf16.msra.mxu3 %v1624_v61 }
  0x77   :  { %550 = vmatpush.bf16.msrb.mxu1 %v1464_v17 }
  0x7b   :  { %551 = vmatpush.bf16.msrb.mxu1 %v1476_v28 }
  0x7f   :  { %552 = vmatpush.bf16.msrb.mxu1 %v1490_v39 }
  0x83   :  { %553 = vmatpush.bf16.msrb.mxu1 %v1501_v48 }
  0x87   :  { %554 = vmatpush.bf16.msrb.mxu1 %v1511_v58 }
  0x8b   :  { %555 = vmatpush.bf16.msrb.mxu1 %v1521_v4 }
  0x96   :  { %v119_v12 = vpop.f32.mrf.mxu0 }
  0x9e   :  { %v121_v0 = vpop.f32.mrf.mxu0 }
  0xab   :  { %v340_v63 = vpop.f32.mrf.mxu1 }
  0xb2   :  { %v353_v6 = vpop.f32.mrf.mxu2 }
  0xb3   :  { %v354_v8 = vadd.f32 %v353_v6, %v340_v63  ;;  %v342_v9 = vpop.f32.mrf.mxu1  ;;  %v1690_v6 = vpop.f32.mrf.mxu0 }
  0xb5   :  { %v383_v18 = vadd.f32 %v354_v8, %v119_v12 }
  0xb7   :  { %1321 = vtanh.f32 %v383_v18 }
  0xba   :  { %v355_v19 = vpop.f32.mrf.mxu2  ;;  %v366_v21 = vpop.f32.mrf.mxu3 }
  0xbb   :  { %v1692_v8 = vpop.f32.mrf.mxu0 }
  0xbd   :  { %v1322_v20 = vpop.eup %1321 }
  0xbe   :  { %v385_v23 = vpack.c.bf16 %v1322_v20, %v1322_v20 }
  0xc0   :  { %458 = vmatmul.bf16.vlgmr.msrb.gmra.mxu2 %v385_v23  ;;  %473 = vmatmul.bf16.vlgmr.msrb.gmra.mxu3 %v385_v23 }
  0xc1   :  { %499 = vmatmul.bf16.vlgmr.msra.gmra.mxu1 %v385_v23  ;;  %561 = vmatpush.bf16.msrb.mxu2 %v1481_v33 }
  0xc2   :  { %574 = vmatpush.bf16.msrb.mxu3 %v1523_v5  ;;  %605 = vmatpush.bf16.msra.mxu1 %v1450_v3  ;;  %v368_v29 = vpop.f32.mrf.mxu3 }
  0xc3   :  { %v1694_v9 = vpop.f32.mrf.mxu0 }
  0xc5   :  { %562 = vmatpush.bf16.msrb.mxu2 %v1487_v38 }
  0xc6   :  { %575 = vmatpush.bf16.msrb.mxu3 %v1534_v15  ;;  %606 = vmatpush.bf16.msra.mxu1 %v1455_v10 }
  0xc9   :  { %563 = vmatpush.bf16.msrb.mxu2 %v1498_v47 }
  0xca   :  { %576 = vmatpush.bf16.msrb.mxu3 %v1544_v26  ;;  %607 = vmatpush.bf16.msra.mxu1 %v1461_v16 }
  0xcb   :  { %v379_v30 = vpop.f32.mrf.mxu1  ;;  %v1696_v12 = vpop.f32.mrf.mxu0 }
  0xcc   :  { %v380_v31 = vadd.f32 %v379_v30, %v366_v21 }
  0xcd   :  { %564 = vmatpush.bf16.msrb.mxu2 %v1508_v57 }
  0xce   :  { %577 = vmatpush.bf16.msrb.mxu3 %v1554_v35  ;;  %608 = vmatpush.bf16.msra.mxu1 %v1473_v24 }
  0xd1   :  { %565 = vmatpush.bf16.msrb.mxu2 %v1518_v2 }
  0xd2   :  { %578 = vmatpush.bf16.msrb.mxu3 %v1560_v41  ;;  %609 = vmatpush.bf16.msra.mxu1 %v1484_v36 }
  0xd3   :  { %v381_v37 = vpop.f32.mrf.mxu1  ;;  %v1698_v18 = vpop.f32.mrf.mxu0 }
  0xd5   :  { %566 = vmatpush.bf16.msrb.mxu2 %v1530_v14 }
  0xd6   :  { %579 = vmatpush.bf16.msrb.mxu3 %v1566_v44  ;;  %610 = vmatpush.bf16.msra.mxu1 %v1495_v45 }
  0xd9   :  { %567 = vmatpush.bf16.msrb.mxu2 %v1541_v25 }
  0xda   :  { %580 = vmatpush.bf16.msrb.mxu3 %v1571_v50  ;;  %611 = vmatpush.bf16.msra.mxu1 %v1505_v54 }
  0xdb   :  { %v1700_v19 = vpop.f32.mrf.mxu0 }
  0xdd   :  { %568 = vmatpush.bf16.msrb.mxu2 %v1551_v34 }
  0xde   :  { %581 = vmatpush.bf16.msrb.mxu3 %v1576_v53  ;;  %612 = vmatpush.bf16.msra.mxu1 %v1515_v1 }
 0x13e   :  { %v1672_v40 = vpop.f32.mrf.mxu1 }
 0x143   :  { %v459_v42 = vpop.f32.mrf.mxu2  ;;  %v474_v43 = vpop.f32.mrf.mxu3 }
 0x144   :  { %v460_v46 = vadd.f32 %v459_v42, %v380_v31 }
 0x146   :  { %1323 = vtanh.f32 %v460_v46  ;;  %v502_v49 = vpop.f32.mrf.mxu1 }
 0x14b   :  { %v461_v51 = vpop.f32.mrf.mxu2  ;;  %v476_v52 = vpop.f32.mrf.mxu3 }
 0x14c   :  { %v1324_v62 = vpop.eup %1323 }
 0x14d   :  { %v464_v63 = vpack.c.bf16 %v1324_v62, %v1324_v62 }
 0x14f   :  { %486 = vmatmul.bf16.vlgmr.msrb.gmra.mxu0 %v464_v63  ;;  %512 = vmatmul.bf16.vlgmr.msra.gmra.mxu2 %v464_v63 }
 0x150   :  { %590 = vmatpush.bf16.msrb.mxu0 %v1526_v13  ;;  %618 = vmatpush.bf16.msra.mxu2 %v1452_v7 }
 0x154   :  { %591 = vmatpush.bf16.msrb.mxu0 %v1537_v22  ;;  %619 = vmatpush.bf16.msra.mxu2 %v1458_v11 }
 0x158   :  { %592 = vmatpush.bf16.msrb.mxu0 %v1547_v32  ;;  %620 = vmatpush.bf16.msra.mxu2 %v1464_v17 }
 0x15c   :  { %593 = vmatpush.bf16.msrb.mxu0 %v1608_v55  ;;  %621 = vmatpush.bf16.msra.mxu2 %v1476_v28 }
 0x160   :  { %594 = vmatpush.bf16.msrb.mxu0 %v1611_v56  ;;  %622 = vmatpush.bf16.msra.mxu2 %v1490_v39 }
 0x164   :  { %595 = vmatpush.bf16.msrb.mxu0 %v1616_v59  ;;  %623 = vmatpush.bf16.msra.mxu2 %v1501_v48 }
 0x168   :  { %596 = vmatpush.bf16.msrb.mxu0 %v1620_v60  ;;  %624 = vmatpush.bf16.msra.mxu2 %v1511_v58 }
 0x16c   :  { %597 = vmatpush.bf16.msrb.mxu0 %v1624_v61  ;;  %625 = vmatpush.bf16.msra.mxu2 %v1521_v4 }
 0x1cc   :  { %v487_v20 = vpop.f32.mrf.mxu0 }
 0x1cd   :  { %v488_v21 = vadd.f32 %v487_v20, %v474_v43 }
 0x1cf   :  { %v517_v23 = vadd.f32 %v488_v21, %v121_v0 }
 0x1d1   :  { %1325 = vtanh.f32 %v517_v23 }
 0x1d2   :  { %v513_v27 = vpop.f32.mrf.mxu2 }
 0x1d3   :  { %v514_v43 = vadd.f32 %v513_v27, %v1672_v40 }
 0x1d4   :  { %v489_v29 = vpop.f32.mrf.mxu0 }
 0x1d7   :  { %v1326_v30 = vpop.eup %1325 }
 0x1d8   :  { %v519_v31 = vpack.c.bf16 %v1326_v30, %v1326_v30 }
 0x1da   :  { %v515_v37 = vpop.f32.mrf.mxu2  ;;  %528 = vmatmul.bf16.vlgmr.msra.gmra.mxu3 %v519_v31  ;;  %543 = vmatmul.bf16.vlgmr.msra.gmra.mxu0 %v519_v31 }
 0x1db   :  { %569 = vmatmul.bf16.vlgmr.msrb.gmra.mxu2 %v519_v31  ;;  %631 = vmatpush.bf16.msra.mxu3 %v1481_v33 }
 0x1dc   :  { %644 = vmatpush.bf16.msra.mxu0 %v1523_v5  ;;  %675 = vmatpush.bf16.msrb.mxu2 %v1450_v3 }
 0x1df   :  { %632 = vmatpush.bf16.msra.mxu3 %v1487_v38 }
 0x1e0   :  { %645 = vmatpush.bf16.msra.mxu0 %v1534_v15  ;;  %676 = vmatpush.bf16.msrb.mxu2 %v1455_v10 }
 0x1e3   :  { %633 = vmatpush.bf16.msra.mxu3 %v1498_v47 }
 0x1e4   :  { %646 = vmatpush.bf16.msra.mxu0 %v1544_v26  ;;  %677 = vmatpush.bf16.msrb.mxu2 %v1461_v16 }
 0x1e7   :  { %634 = vmatpush.bf16.msra.mxu3 %v1508_v57 }
 0x1e8   :  { %647 = vmatpush.bf16.msra.mxu0 %v1554_v35  ;;  %678 = vmatpush.bf16.msrb.mxu2 %v1473_v24 }
 0x1eb   :  { %635 = vmatpush.bf16.msra.mxu3 %v1518_v2 }
 0x1ec   :  { %648 = vmatpush.bf16.msra.mxu0 %v1560_v41  ;;  %679 = vmatpush.bf16.msrb.mxu2 %v1484_v36 }
 0x1ef   :  { %636 = vmatpush.bf16.msra.mxu3 %v1530_v14 }
 0x1f0   :  { %649 = vmatpush.bf16.msra.mxu0 %v1566_v44  ;;  %680 = vmatpush.bf16.msrb.mxu2 %v1495_v45 }
 0x1f3   :  { %637 = vmatpush.bf16.msra.mxu3 %v1541_v25 }
 0x1f4   :  { %650 = vmatpush.bf16.msra.mxu0 %v1571_v50  ;;  %681 = vmatpush.bf16.msrb.mxu2 %v1505_v54 }
 0x1f7   :  { %638 = vmatpush.bf16.msra.mxu3 %v1551_v34 }
 0x1f8   :  { %651 = vmatpush.bf16.msra.mxu0 %v1576_v53  ;;  %682 = vmatpush.bf16.msrb.mxu2 %v1515_v1 }
 0x257   :  { %v544_v42 = vpop.f32.mrf.mxu0 }
 0x25d   :  { %v529_v46 = vpop.f32.mrf.mxu3 }
 0x25e   :  { %v530_v49 = vadd.f32 %v529_v46, %v514_v43  ;;  %v570_v51 = vpop.f32.mrf.mxu2 }
 0x25f   :  { %v546_v52 = vpop.f32.mrf.mxu0 }
 0x260   :  { %1327 = vtanh.f32 %v530_v49 }
 0x265   :  { %v531_v62 = vpop.f32.mrf.mxu3 }
 0x266   :  { %v1328_v63 = vpop.eup %1327  ;;  %v572_v0 = vpop.f32.mrf.mxu2 }
 0x267   :  { %v534_v20 = vpack.c.bf16 %v1328_v63, %v1328_v63 }
 0x269   :  { %556 = vmatmul.bf16.vlgmr.msrb.gmra.mxu1 %v534_v20  ;;  %582 = vmatmul.bf16.vlgmr.msrb.gmra.mxu3 %v534_v20 }
 0x26a   :  { %660 = vmatpush.bf16.msrb.mxu1 %v1526_v13  ;;  %688 = vmatpush.bf16.msrb.mxu3 %v1452_v7 }
 0x26e   :  { %661 = vmatpush.bf16.msrb.mxu1 %v1537_v22  ;;  %689 = vmatpush.bf16.msrb.mxu3 %v1458_v11 }
 0x272   :  { %662 = vmatpush.bf16.msrb.mxu1 %v1547_v32  ;;  %690 = vmatpush.bf16.msrb.mxu3 %v1464_v17 }
 0x276   :  { %663 = vmatpush.bf16.msrb.mxu1 %v1608_v55  ;;  %691 = vmatpush.bf16.msrb.mxu3 %v1476_v28 }
 0x27a   :  { %664 = vmatpush.bf16.msrb.mxu1 %v1611_v56  ;;  %692 = vmatpush.bf16.msrb.mxu3 %v1490_v39 }
 0x27e   :  { %665 = vmatpush.bf16.msrb.mxu1 %v1616_v59  ;;  %693 = vmatpush.bf16.msrb.mxu3 %v1501_v48 }
 0x282   :  { %666 = vmatpush.bf16.msrb.mxu1 %v1620_v60  ;;  %694 = vmatpush.bf16.msrb.mxu3 %v1511_v58 }
 0x286   :  { %667 = vmatpush.bf16.msrb.mxu1 %v1624_v61  ;;  %695 = vmatpush.bf16.msrb.mxu3 %v1521_v4 }
 0x2e6   :  { %v557_v40 = vpop.f32.mrf.mxu1 }
 0x2e7   :  { %v558_v21 = vadd.f32 %v557_v40, %v544_v42 }
 0x2e9   :  { %v587_v23 = vadd.f32 %v558_v21, %v1690_v6 }
 0x2eb   :  { %1329 = vtanh.f32 %v587_v23 }
 0x2ec   :  { %v583_v27 = vpop.f32.mrf.mxu3 }
 0x2ed   :  { %v584_v6 = vadd.f32 %v583_v27, %v570_v51 }
 0x2ee   :  { %v559_v29 = vpop.f32.mrf.mxu1 }
 0x2f1   :  { %v1330_v30 = vpop.eup %1329 }
 0x2f2   :  { %v589_v31 = vpack.c.bf16 %v1330_v30, %v1330_v30 }
 0x2f4   :  { %v585_v37 = vpop.f32.mrf.mxu3  ;;  %598 = vmatmul.bf16.vlgmr.msrb.gmra.mxu0 %v589_v31  ;;  %613 = vmatmul.bf16.vlgmr.msra.gmra.mxu1 %v589_v31 }
 0x2f5   :  { %639 = vmatmul.bf16.vlgmr.msra.gmra.mxu3 %v589_v31  ;;  %701 = vmatpush.bf16.msrb.mxu0 %v1481_v33 }
 0x2f6   :  { %714 = vmatpush.bf16.msra.mxu1 %v1523_v5  ;;  %745 = vmatpush.bf16.msra.mxu3 %v1450_v3 }
 0x2f9   :  { %702 = vmatpush.bf16.msrb.mxu0 %v1487_v38 }
 0x2fa   :  { %715 = vmatpush.bf16.msra.mxu1 %v1534_v15  ;;  %746 = vmatpush.bf16.msra.mxu3 %v1455_v10 }
 0x2fd   :  { %703 = vmatpush.bf16.msrb.mxu0 %v1498_v47 }
 0x2fe   :  { %716 = vmatpush.bf16.msra.mxu1 %v1544_v26  ;;  %747 = vmatpush.bf16.msra.mxu3 %v1461_v16 }
 0x301   :  { %704 = vmatpush.bf16.msrb.mxu0 %v1508_v57 }
 0x302   :  { %717 = vmatpush.bf16.msra.mxu1 %v1554_v35  ;;  %748 = vmatpush.bf16.msra.mxu3 %v1473_v24 }
 0x305   :  { %705 = vmatpush.bf16.msrb.mxu0 %v1518_v2 }
 0x306   :  { %718 = vmatpush.bf16.msra.mxu1 %v1560_v41  ;;  %749 = vmatpush.bf16.msra.mxu3 %v1484_v36 }
 0x309   :  { %706 = vmatpush.bf16.msrb.mxu0 %v1530_v14 }
 0x30a   :  { %719 = vmatpush.bf16.msra.mxu1 %v1566_v44  ;;  %750 = vmatpush.bf16.msra.mxu3 %v1495_v45 }
 0x30d   :  { %707 = vmatpush.bf16.msrb.mxu0 %v1541_v25 }
 0x30e   :  { %720 = vmatpush.bf16.msra.mxu1 %v1571_v50  ;;  %751 = vmatpush.bf16.msra.mxu3 %v1505_v54 }
 0x311   :  { %708 = vmatpush.bf16.msrb.mxu0 %v1551_v34 }
 0x312   :  { %721 = vmatpush.bf16.msra.mxu1 %v1576_v53  ;;  %752 = vmatpush.bf16.msra.mxu3 %v1515_v1 }
 0x371   :  { %v599_v42 = vpop.f32.mrf.mxu0  ;;  %v614_v43 = vpop.f32.mrf.mxu1 }
 0x372   :  { %v600_v46 = vadd.f32 %v599_v42, %v584_v6 }
 0x374   :  { %1331 = vtanh.f32 %v600_v46 }
 0x378   :  { %v640_v49 = vpop.f32.mrf.mxu3 }
 0x379   :  { %v601_v52 = vpop.f32.mrf.mxu0  ;;  %v616_v62 = vpop.f32.mrf.mxu1 }
 0x37a   :  { %v1332_v63 = vpop.eup %1331 }
 0x37b   :  { %v604_v0 = vpack.c.bf16 %v1332_v63, %v1332_v63 }
 0x37d   :  { %626 = vmatmul.bf16.vlgmr.msra.gmra.mxu2 %v604_v0  ;;  %652 = vmatmul.bf16.vlgmr.msra.gmra.mxu0 %v604_v0 }
 0x37e   :  { %730 = vmatpush.bf16.msra.mxu2 %v1526_v13  ;;  %758 = vmatpush.bf16.msra.mxu0 %v1452_v7 }
 0x380   :  { %v642_v20 = vpop.f32.mrf.mxu3 }
 0x382   :  { %731 = vmatpush.bf16.msra.mxu2 %v1537_v22  ;;  %759 = vmatpush.bf16.msra.mxu0 %v1458_v11 }
 0x386   :  { %732 = vmatpush.bf16.msra.mxu2 %v1547_v32  ;;  %760 = vmatpush.bf16.msra.mxu0 %v1464_v17 }
 0x38a   :  { %733 = vmatpush.bf16.msra.mxu2 %v1608_v55  ;;  %761 = vmatpush.bf16.msra.mxu0 %v1476_v28 }
 0x38e   :  { %734 = vmatpush.bf16.msra.mxu2 %v1611_v56  ;;  %762 = vmatpush.bf16.msra.mxu0 %v1490_v39 }
 0x392   :  { %735 = vmatpush.bf16.msra.mxu2 %v1616_v59  ;;  %763 = vmatpush.bf16.msra.mxu0 %v1501_v48 }
 0x396   :  { %736 = vmatpush.bf16.msra.mxu2 %v1620_v60  ;;  %764 = vmatpush.bf16.msra.mxu0 %v1511_v58 }
 0x39a   :  { %737 = vmatpush.bf16.msra.mxu2 %v1624_v61  ;;  %765 = vmatpush.bf16.msra.mxu0 %v1521_v4 }
 0x3fa   :  { %v653_v51 = vpop.f32.mrf.mxu0 }
 0x400   :  { %v627_v40 = vpop.f32.mrf.mxu2 }
 0x401   :  { %v628_v21 = vadd.f32 %v627_v40, %v614_v43 }
 0x402   :  { %v655_v23 = vpop.f32.mrf.mxu0 }
 0x403   :  { %v657_v27 = vadd.f32 %v628_v21, %v1692_v8  ;;  %v654_v8 = vadd.f32 %v653_v51, %v640_v49 }
 0x405   :  { %1333 = vtanh.f32 %v657_v27 }
 0x408   :  { %v629_v29 = vpop.f32.mrf.mxu2 }
 0x40b   :  { %v1334_v30 = vpop.eup %1333 }
 0x40c   :  { %v659_v31 = vpack.c.bf16 %v1334_v30, %v1334_v30 }
 0x40e   :  { %668 = vmatmul.bf16.vlgmr.msrb.gmra.mxu1 %v659_v31  ;;  %683 = vmatmul.bf16.vlgmr.msrb.gmra.mxu2 %v659_v31 }
 0x40f   :  { %709 = vmatmul.bf16.vlgmr.msrb.gmra.mxu0 %v659_v31  ;;  %771 = vmatpush.bf16.msrb.mxu1 %v1481_v33 }
 0x410   :  { %784 = vmatpush.bf16.msrb.mxu2 %v1523_v5  ;;  %815 = vmatpush.bf16.msrb.mxu0 %v1450_v3 }
 0x413   :  { %772 = vmatpush.bf16.msrb.mxu1 %v1487_v38 }
 0x414   :  { %785 = vmatpush.bf16.msrb.mxu2 %v1534_v15  ;;  %816 = vmatpush.bf16.msrb.mxu0 %v1455_v10 }
 0x417   :  { %773 = vmatpush.bf16.msrb.mxu1 %v1498_v47 }
 0x418   :  { %786 = vmatpush.bf16.msrb.mxu2 %v1544_v26  ;;  %817 = vmatpush.bf16.msrb.mxu0 %v1461_v16 }
 0x41b   :  { %774 = vmatpush.bf16.msrb.mxu1 %v1508_v57 }
 0x41c   :  { %787 = vmatpush.bf16.msrb.mxu2 %v1554_v35  ;;  %818 = vmatpush.bf16.msrb.mxu0 %v1473_v24 }
 0x41f   :  { %775 = vmatpush.bf16.msrb.mxu1 %v1518_v2 }
 0x420   :  { %788 = vmatpush.bf16.msrb.mxu2 %v1560_v41  ;;  %819 = vmatpush.bf16.msrb.mxu0 %v1484_v36 }
 0x423   :  { %776 = vmatpush.bf16.msrb.mxu1 %v1530_v14 }
 0x424   :  { %789 = vmatpush.bf16.msrb.mxu2 %v1566_v44  ;;  %820 = vmatpush.bf16.msrb.mxu0 %v1495_v45 }
 0x427   :  { %777 = vmatpush.bf16.msrb.mxu1 %v1541_v25 }
 0x428   :  { %790 = vmatpush.bf16.msrb.mxu2 %v1571_v50  ;;  %821 = vmatpush.bf16.msrb.mxu0 %v1505_v54 }
 0x42b   :  { %778 = vmatpush.bf16.msrb.mxu1 %v1551_v34 }
 0x42c   :  { %791 = vmatpush.bf16.msrb.mxu2 %v1576_v53  ;;  %822 = vmatpush.bf16.msrb.mxu0 %v1515_v1 }
 0x48b   :  { %v669_v37 = vpop.f32.mrf.mxu1 }
 0x48c   :  { %v670_v6 = vadd.f32 %v669_v37, %v654_v8  ;;  %v1809_v42 = vpop.f32.mrf.mxu0 }
 0x48e   :  { %1335 = vtanh.f32 %v670_v6  ;;  %v1312_v6 = vld [vmem:[%s1927_s4 + $0x30] sm:$0xff] }
 0x491   :  { %v684_v43 = vpop.f32.mrf.mxu2 }
 0x493   :  { %v671_v46 = vpop.f32.mrf.mxu1 }
 0x494   :  { %v1336_v52 = vpop.eup %1335  ;;  %v712_v62 = vpop.f32.mrf.mxu0 }
 0x495   :  { %v674_v63 = vpack.c.bf16 %v1336_v52, %v1336_v52  ;;  %v1309_v52 = vld [vmem:[%s1927_s4 + $0x18] sm:$0xff] }
 0x497   :  { %696 = vmatmul.bf16.vlgmr.msrb.gmra.mxu3 %v674_v63  ;;  %722 = vmatmul.bf16.vlgmr.msra.gmra.mxu1 %v674_v63 }
 0x498   :  { %800 = vmatpush.bf16.msrb.mxu3 %v1526_v13  ;;  %828 = vmatpush.bf16.msra.mxu1 %v1452_v7 }
 0x499   :  { %v686_v0 = vpop.f32.mrf.mxu2 }
 0x49c   :  { %801 = vmatpush.bf16.msrb.mxu3 %v1537_v22  ;;  %829 = vmatpush.bf16.msra.mxu1 %v1458_v11 }
 0x4a0   :  { %802 = vmatpush.bf16.msrb.mxu3 %v1547_v32  ;;  %830 = vmatpush.bf16.msra.mxu1 %v1464_v17 }
 0x4a4   :  { %803 = vmatpush.bf16.msrb.mxu3 %v1608_v55  ;;  %831 = vmatpush.bf16.msra.mxu1 %v1476_v28 }
 0x4a8   :  { %804 = vmatpush.bf16.msrb.mxu3 %v1611_v56  ;;  %832 = vmatpush.bf16.msra.mxu1 %v1490_v39 }
 0x4ac   :  { %805 = vmatpush.bf16.msrb.mxu3 %v1616_v59  ;;  %833 = vmatpush.bf16.msra.mxu1 %v1501_v48 }
 0x4b0   :  { %806 = vmatpush.bf16.msrb.mxu3 %v1620_v60  ;;  %834 = vmatpush.bf16.msra.mxu1 %v1511_v58 }
 0x4b4   :  { %807 = vmatpush.bf16.msrb.mxu3 %v1624_v61  ;;  %835 = vmatpush.bf16.msra.mxu1 %v1521_v4 }
 0x514   :  { %v723_v49 = vpop.f32.mrf.mxu1 }
 0x51a   :  { %v697_v20 = vpop.f32.mrf.mxu3 }
 0x51b   :  { %v698_v51 = vadd.f32 %v697_v20, %v684_v43  ;;  %v1310_v43 = vld [vmem:[%s1927_s4 + $0x20] sm:$0xff] }
 0x51c   :  { %v725_v40 = vpop.f32.mrf.mxu1 }
 0x51d   :  { %v727_v21 = vadd.f32 %v698_v51, %v1694_v9 }
 0x51f   :  { %1337 = vtanh.f32 %v727_v21  ;;  %v1308_v21 = vld [vmem:[%s1927_s4 + $0x10] sm:$0xff] }
 0x522   :  { %v699_v23 = vpop.f32.mrf.mxu3 }
 0x523   :  { %v1307_v23 = vld [vmem:[%s1927_s4 + $0x8] sm:$0xff] }
 0x525   :  { %v1338_v27 = vpop.eup %1337 }
 0x526   :  { %v729_v29 = vpack.c.bf16 %v1338_v27, %v1338_v27  ;;  %v1306_v27 = vld [vmem:[%s1927_s4] sm:$0xff] }
 0x528   :  { %738 = vmatmul.bf16.vlgmr.msra.gmra.mxu2 %v729_v29  ;;  %753 = vmatmul.bf16.vlgmr.msra.gmra.mxu3 %v729_v29 }
 0x529   :  { %779 = vmatmul.bf16.vlgmr.msrb.gmra.mxu1 %v729_v29  ;;  %841 = vmatpush.bf16.msra.mxu2 %v1481_v33 }
 0x52a   :  { %854 = vmatpush.bf16.msra.mxu3 %v1523_v5  ;;  %885 = vmatpush.bf16.msrb.mxu1 %v1450_v3 }
 0x52d   :  { %842 = vmatpush.bf16.msra.mxu2 %v1487_v38 }
 0x52e   :  { %855 = vmatpush.bf16.msra.mxu3 %v1534_v15  ;;  %886 = vmatpush.bf16.msrb.mxu1 %v1455_v10  ;;  %v724_v10 = vadd.f32 %v723_v49, %v1809_v42  ;;  %v1311_v42 = vld [vmem:[%s1927_s4 + $0x28] sm:$0xff] }
 0x531   :  { %843 = vmatpush.bf16.msra.mxu2 %v1498_v47 }
 0x532   :  { %856 = vmatpush.bf16.msra.mxu3 %v1544_v26  ;;  %887 = vmatpush.bf16.msrb.mxu1 %v1461_v16 }
 0x535   :  { %844 = vmatpush.bf16.msra.mxu2 %v1508_v57 }
 0x536   :  { %857 = vmatpush.bf16.msra.mxu3 %v1554_v35  ;;  %888 = vmatpush.bf16.msrb.mxu1 %v1473_v24 }
 0x539   :  { %845 = vmatpush.bf16.msra.mxu2 %v1518_v2 }
 0x53a   :  { %858 = vmatpush.bf16.msra.mxu3 %v1560_v41  ;;  %889 = vmatpush.bf16.msrb.mxu1 %v1484_v36 }
 0x53d   :  { %846 = vmatpush.bf16.msra.mxu2 %v1530_v14 }
 0x53e   :  { %859 = vmatpush.bf16.msra.mxu3 %v1566_v44  ;;  %890 = vmatpush.bf16.msrb.mxu1 %v1495_v45 }
 0x541   :  { %847 = vmatpush.bf16.msra.mxu2 %v1541_v25 }
 0x542   :  { %860 = vmatpush.bf16.msra.mxu3 %v1571_v50  ;;  %891 = vmatpush.bf16.msrb.mxu1 %v1505_v54 }
 0x545   :  { %848 = vmatpush.bf16.msra.mxu2 %v1551_v34 }
 0x546   :  { %861 = vmatpush.bf16.msra.mxu3 %v1576_v53  ;;  %892 = vmatpush.bf16.msrb.mxu1 %v1515_v1 }
 0x5a6   :  { %v780_v3 = vpop.f32.mrf.mxu1 }
 0x5ab   :  { %v739_v16 = vpop.f32.mrf.mxu2  ;;  %v754_v24 = vpop.f32.mrf.mxu3 }
 0x5ac   :  { %v740_v36 = vadd.f32 %v739_v16, %v724_v10 }
 0x5ae   :  { %1339 = vtanh.f32 %v740_v36  ;;  %v782_v45 = vpop.f32.mrf.mxu1 }
 0x5b3   :  { %v741_v9 = vpop.f32.mrf.mxu2  ;;  %v756_v30 = vpop.f32.mrf.mxu3 }
 0x5b4   :  { %v1340_v31 = vpop.eup %1339 }
 0x5b5   :  { %v744_v8 = vpack.c.bf16 %v1340_v31, %v1340_v31 }
 0x5b7   :  { %766 = vmatmul.bf16.vlgmr.msra.gmra.mxu0 %v744_v8  ;;  %792 = vmatmul.bf16.vlgmr.msrb.gmra.mxu2 %v744_v8 }
 0x5b8   :  { %870 = vmatpush.bf16.msra.mxu0 %v1526_v13  ;;  %898 = vmatpush.bf16.msrb.mxu2 %v1452_v7 }
 0x5bc   :  { %871 = vmatpush.bf16.msra.mxu0 %v1537_v22  ;;  %899 = vmatpush.bf16.msrb.mxu2 %v1458_v11 }
 0x5c0   :  { %872 = vmatpush.bf16.msra.mxu0 %v1547_v32  ;;  %900 = vmatpush.bf16.msrb.mxu2 %v1464_v17 }
 0x5c4   :  { %873 = vmatpush.bf16.msra.mxu0 %v1608_v55  ;;  %901 = vmatpush.bf16.msrb.mxu2 %v1476_v28 }
 0x5c8   :  { %874 = vmatpush.bf16.msra.mxu0 %v1611_v56  ;;  %902 = vmatpush.bf16.msrb.mxu2 %v1490_v39 }
 0x5cc   :  { %875 = vmatpush.bf16.msra.mxu0 %v1616_v59  ;;  %903 = vmatpush.bf16.msrb.mxu2 %v1501_v48 }
 0x5d0   :  { %876 = vmatpush.bf16.msra.mxu0 %v1620_v60  ;;  %904 = vmatpush.bf16.msrb.mxu2 %v1511_v58 }
 0x5d4   :  { %877 = vmatpush.bf16.msra.mxu0 %v1624_v61  ;;  %905 = vmatpush.bf16.msrb.mxu2 %v1521_v4 }
 0x634   :  { %v767_v7 = vpop.f32.mrf.mxu0 }
 0x635   :  { %v768_v11 = vadd.f32 %v767_v7, %v754_v24 }
 0x637   :  { %v797_v17 = vadd.f32 %v768_v11, %v1696_v12 }
 0x639   :  { %1341 = vtanh.f32 %v797_v17 }
 0x63a   :  { %v793_v28 = vpop.f32.mrf.mxu2 }
 0x63c   :  { %v769_v54 = vpop.f32.mrf.mxu0 }
 0x63f   :  { %v1342_v39 = vpop.eup %1341 }
 0x640   :  { %v799_v1 = vpack.c.bf16 %v1342_v39, %v1342_v39 }
 0x642   :  { %v795_v37 = vpop.f32.mrf.mxu2  ;;  %808 = vmatmul.bf16.vlgmr.msrb.gmra.mxu3 %v799_v1  ;;  %823 = vmatmul.bf16.vlgmr.msrb.gmra.mxu0 %v799_v1 }
 0x643   :  { %849 = vmatmul.bf16.vlgmr.msra.gmra.mxu2 %v799_v1  ;;  %911 = vmatpush.bf16.msrb.mxu3 %v1481_v33 }
 0x644   :  { %924 = vmatpush.bf16.msrb.mxu0 %v1523_v5 }
 0x647   :  { %912 = vmatpush.bf16.msrb.mxu3 %v1487_v38  ;;  %v794_v38 = vadd.f32 %v793_v28, %v780_v3 }
 0x648   :  { %925 = vmatpush.bf16.msrb.mxu0 %v1534_v15 }
 0x64b   :  { %913 = vmatpush.bf16.msrb.mxu3 %v1498_v47 }
 0x64c   :  { %926 = vmatpush.bf16.msrb.mxu0 %v1544_v26 }
 0x64f   :  { %914 = vmatpush.bf16.msrb.mxu3 %v1508_v57 }
 0x650   :  { %927 = vmatpush.bf16.msrb.mxu0 %v1554_v35 }
 0x653   :  { %915 = vmatpush.bf16.msrb.mxu3 %v1518_v2 }
 0x654   :  { %928 = vmatpush.bf16.msrb.mxu0 %v1560_v41 }
 0x657   :  { %916 = vmatpush.bf16.msrb.mxu3 %v1530_v14 }
 0x658   :  { %929 = vmatpush.bf16.msrb.mxu0 %v1566_v44 }
 0x65b   :  { %917 = vmatpush.bf16.msrb.mxu3 %v1541_v25 }
 0x65c   :  { %930 = vmatpush.bf16.msrb.mxu0 %v1571_v50 }
 0x65f   :  { %918 = vmatpush.bf16.msrb.mxu3 %v1551_v34 }
 0x660   :  { %931 = vmatpush.bf16.msrb.mxu0 %v1576_v53 }
 0x6bf   :  { %v824_v33 = vpop.f32.mrf.mxu0 }
 0x6c5   :  { %v809_v47 = vpop.f32.mrf.mxu3 }
 0x6c6   :  { %v810_v48 = vadd.f32 %v809_v47, %v794_v38  ;;  %v850_v57 = vpop.f32.mrf.mxu2 }
 0x6c7   :  { %v826_v58 = vpop.f32.mrf.mxu0 }
 0x6c8   :  { %1343 = vtanh.f32 %v810_v48 }
 0x6cd   :  { %v811_v2 = vpop.f32.mrf.mxu3 }
 0x6ce   :  { %v1344_v4 = vpop.eup %1343  ;;  %v852_v5 = vpop.f32.mrf.mxu2 }
 0x6cf   :  { %v814_v14 = vpack.c.bf16 %v1344_v4, %v1344_v4 }
 0x6d1   :  { %836 = vmatmul.bf16.vlgmr.msra.gmra.mxu1 %v814_v14  ;;  %862 = vmatmul.bf16.vlgmr.msra.gmra.mxu3 %v814_v14 }
 0x6d2   :  { %940 = vmatpush.bf16.msra.mxu1 %v1526_v13 }
 0x6d6   :  { %941 = vmatpush.bf16.msra.mxu1 %v1537_v22 }
 0x6da   :  { %942 = vmatpush.bf16.msra.mxu1 %v1547_v32 }
 0x6de   :  { %943 = vmatpush.bf16.msra.mxu1 %v1608_v55 }
 0x6e2   :  { %944 = vmatpush.bf16.msra.mxu1 %v1611_v56 }
 0x6e6   :  { %945 = vmatpush.bf16.msra.mxu1 %v1616_v59 }
 0x6ea   :  { %946 = vmatpush.bf16.msra.mxu1 %v1620_v60 }
 0x6ee   :  { %947 = vmatpush.bf16.msra.mxu1 %v1624_v61 }
 0x74e   :  { %v837_v15 = vpop.f32.mrf.mxu1 }
 0x74f   :  { %v838_v25 = vadd.f32 %v837_v15, %v824_v33 }
 0x751   :  { %v867_v26 = vadd.f32 %v838_v25, %v1698_v18  ;;  %v1313_v18 = vld [vmem:[%s1927_s4 + $0x38] sm:$0xff] }
 0x752   :  { %1019 = vmatpush.bf16.msra.mxu2 %v1313_v18 }
 0x753   :  { %1345 = vtanh.f32 %v867_v26 }
 0x754   :  { %v863_v13 = vpop.f32.mrf.mxu3 }
 0x755   :  { %v864_v41 = vadd.f32 %v863_v13, %v850_v57 }
 0x756   :  { %v839_v34 = vpop.f32.mrf.mxu1  ;;  %1020 = vmatpush.bf16.msra.mxu2 %v1312_v6 }
 0x759   :  { %v1346_v22 = vpop.eup %1345 }
 0x75a   :  { %v869_v35 = vpack.c.bf16 %v1346_v22, %v1346_v22  ;;  %1021 = vmatpush.bf16.msra.mxu2 %v1311_v42 }
 0x75c   :  { %v865_v32 = vpop.f32.mrf.mxu3  ;;  %878 = vmatmul.bf16.vlgmr.msra.gmra.mxu0 %v869_v35  ;;  %893 = vmatmul.bf16.vlgmr.msrb.gmra.mxu1 %v869_v35 }
 0x75d   :  { %919 = vmatmul.bf16.vlgmr.msrb.gmra.mxu3 %v869_v35 }
 0x75e   :  { %1022 = vmatpush.bf16.msra.mxu2 %v1310_v43 }
 0x762   :  { %1023 = vmatpush.bf16.msra.mxu2 %v1309_v52 }
 0x766   :  { %1024 = vmatpush.bf16.msra.mxu2 %v1308_v21 }
 0x76a   :  { %1025 = vmatpush.bf16.msra.mxu2 %v1307_v23 }
 0x76e   :  { %1026 = vmatpush.bf16.msra.mxu2 %v1306_v27 }
 0x7d9   :  { %v879_v44 = vpop.f32.mrf.mxu0  ;;  %v894_v50 = vpop.f32.mrf.mxu1 }
 0x7da   :  { %v880_v53 = vadd.f32 %v879_v44, %v864_v41 }
 0x7dc   :  { %1347 = vtanh.f32 %v880_v53 }
 0x7e0   :  { %v920_v55 = vpop.f32.mrf.mxu3 }
 0x7e1   :  { %v881_v56 = vpop.f32.mrf.mxu0  ;;  %v896_v59 = vpop.f32.mrf.mxu1 }
 0x7e2   :  { %v1348_v60 = vpop.eup %1347 }
 0x7e3   :  { %v884_v61 = vpack.c.bf16 %v1348_v60, %v1348_v60 }
 0x7e5   :  { %906 = vmatmul.bf16.vlgmr.msrb.gmra.mxu2 %v884_v61  ;;  %932 = vmatmul.bf16.vlgmr.msrb.gmra.mxu0 %v884_v61 }
 0x7e8   :  { %v922_v12 = vpop.f32.mrf.mxu3 }
 0x862   :  { %v933_v46 = vpop.f32.mrf.mxu0 }
 0x868   :  { %v907_v62 = vpop.f32.mrf.mxu2 }
 0x869   :  { %v908_v63 = vadd.f32 %v907_v62, %v894_v50 }
 0x86a   :  { %v935_v0 = vpop.f32.mrf.mxu0 }
 0x86b   :  { %v937_v49 = vadd.f32 %v908_v63, %v1700_v19  ;;  %v934_v19 = vadd.f32 %v933_v46, %v920_v55 }
 0x86d   :  { %1349 = vtanh.f32 %v937_v49 }
 0x870   :  { %v909_v20 = vpop.f32.mrf.mxu2 }
 0x873   :  { %v1350_v51 = vpop.eup %1349 }
 0x874   :  { %v939_v40 = vpack.c.bf16 %v1350_v51, %v1350_v51 }
 0x876   :  { %948 = vmatmul.bf16.vlgmr.msra.gmra.mxu1 %v939_v40 }
 0x8f3   :  { %v949_v29 = vpop.f32.mrf.mxu1 }
 0x8f4   :  { %v950_v3 = vadd.f32 %v949_v29, %v934_v19 }
 0x8f6   :  { %1351 = vtanh.f32 %v950_v3 }
 0x8fb   :  { %v951_v10 = vpop.f32.mrf.mxu1 }
 0x8fc   :  { %v1352_v16 = vpop.eup %1351 }
 0x8fd   :  { %v954_v24 = vpack.c.bf16 %v1352_v16, %v1352_v16 }
 0x8ff   :  { %1027 = vmatmul.bf16.vlgmr.msra.gmra.mxu2 %v954_v24 }
 0x982   :  { %v1028_v36 = vpop.f32.mrf.mxu2 }
 0x983   :  { %1353 = vtanh.f32 %v1028_v36 }
 0x989   :  { %v1354_v45 = vpop.eup %1353 }
 0x98a   :  { %1033 = vst [vmem:[%s1928_s5] sm:$0xff] %v1354_v45  ;;  %v1030_v9 = vpop.f32.mrf.mxu2 }
 0x98b   :  { %1038 = vsyncpa [#allocation3], 1 }
 0x98c   :  { %1039 = vsyncpa [#allocation5], 1 }

</bundles_post_ra>
